<compile_context>
chip_gen: v6e
topology: v6e:2x2x1
jax: 0.10.0
libtpu: 0.0.40
codegen_flags: <defaults>
</compile_context>

<pallas_src>
import functools

import jax
import jax.numpy as jnp
from jax.experimental import pallas as pl
from jax.experimental.pallas import tpu as pltpu

LOG_STD_MAX = 2.0
LOG_STD_MIN = -5.0
LOG_STD_INIT = -3.0
INIT_NOISE = 1e-3
LEAKY_SLOPE = 0.01  # PyTorch nn.LeakyReLU default negative_slope


def _round_up(x, m):
    return ((x + m - 1) // m) * m


def _cdiv(a, b):
    return (a + b - 1) // b


def _leaky_relu(x):
    # slope in (0,1)  =>  max(x, slope*x) == leaky_relu(x)
    return jnp.maximum(x, LEAKY_SLOPE * x)


# ---------------------------------------------------------------------------
# Generation-aware hardware heuristics
# ---------------------------------------------------------------------------
def _tpu_generation():
    """Best-effort (default_scoped_vmem_bytes, physical_vmem_bytes, num_tensorcores)."""
    # Conservative fallback: smallest scoped default (v5e) + smallest physical
    # VMEM (v7x) + one TensorCore.
    default_scoped, physical, num_tc = 16 << 20, 64 << 20, 1
    kind = ""
    try:
        kind = jax.devices()[0].device_kind.lower()
    except Exception:
        pass
    if "v5" in kind:
        default_scoped, physical, num_tc = 16 << 20, 128 << 20, 1
    elif "v6" in kind:
        default_scoped, physical, num_tc = 32 << 20, 128 << 20, 1
    elif "7" in kind:
        default_scoped, physical, num_tc = 32 << 20, 64 << 20, 2
    try:  # refine physical VMEM from the runtime when available
        info = pltpu.get_tpu_info()
        physical = int(getattr(info, "vmem_capacity_bytes", physical))
    except Exception:
        pass
    return default_scoped, physical, num_tc


def _choose_grid(B, obs_size, head_pad, h1, h2, obs_itemsize, weight_bytes,
                 default_scoped, num_tc, block_b=None):
    """Pick (block_b, n_steps): n_steps first (bounded padding), block_b from a
    VMEM budget that accounts for the obs width."""
    if block_b is not None:
        block_b = max(8, _round_up(block_b, 8))
        return block_b, _cdiv(B, block_b)

    # Batch-tile VMEM budget: ~70% of the generation's default scoped limit,
    # with the (double-buffer-worst-case) weights resident.
    budget = max(int(0.7 * default_scoped) - 2 * weight_bytes, 1 << 20)
    per_row = (2 * obs_size * obs_itemsize      # double-buffered obs tile
               + 2 * head_pad * 4               # double-buffered f32 output tile
               + (h1 + h2 + head_pad) * 4)      # f32 activation scratch (approx)
    max_block_b = max(8, (budget // max(per_row, 1)) // 8 * 8)

    # Single grid step unless (a) the batch tile would not fit VMEM, or
    # (b) on a 2-TC chip there is enough work to amortize ~0.35us/step/core.
    n_steps = 1
    if num_tc >= 2 and B >= 8192:
        n_steps = num_tc
    n_steps = max(n_steps, _cdiv(_round_up(B, 8), max_block_b))
    if num_tc >= 2 and n_steps > 1 and n_steps % num_tc:
        n_steps = _round_up(n_steps, num_tc)   # equal work on both TCs

    block_b = _round_up(_cdiv(B, n_steps), 8)  # <= ~7 padded rows per step
    return block_b, n_steps


# ---------------------------------------------------------------------------
# Kernel
# ---------------------------------------------------------------------------
def actor_kernel(obs_ref, w1_ref, b1_ref, w2_ref, b2_ref, wh_ref, bh_ref,
                 out_ref, *, act, compute_dtype):
    """Fused 2-layer MLP trunk + fused lane-padded (mean | log_std) head."""
    # Cast to the MXU compute dtype on-chip (no extra HBM convert pass).
    x = obs_ref[...].astype(compute_dtype)

    # trunk layer 1: Linear + LeakyReLU (f32 MXU accumulation, f32 bias)
    h = jnp.dot(x, w1_ref[...], preferred_element_type=jnp.float32) + b1_ref[...]
    h = _leaky_relu(h).astype(compute_dtype)

    # trunk layer 2: Linear + LeakyReLU
    h = jnp.dot(h, w2_ref[...], preferred_element_type=jnp.float32) + b2_ref[...]
    h = _leaky_relu(h).astype(compute_dtype)

    # fused, lane-dense head slab: [block_b, head_pad] = [mean | log_std | 0-pad]
    head = jnp.dot(h, wh_ref[...], preferred_element_type=jnp.float32) + bh_ref[...]

    # tanh-squash only the log_std lanes (lane >= act); padded lanes are sliced
    # off in the wrapper so their value is irrelevant. tanh runs on the EUP.
    squashed = (jnp.tanh(head) + 1.0) * (0.5 * (LOG_STD_MAX - LOG_STD_MIN)) + LOG_STD_MIN
    lane = jax.lax.broadcasted_iota(jnp.int32, head.shape, 1)
    out_ref[...] = jnp.where(lane >= act, squashed, head)


# ---------------------------------------------------------------------------
# Wrapper
# ---------------------------------------------------------------------------
def actor_forward(obs, params, *, block_b=None, compute_dtype=jnp.float32):
    """Runs the fused Actor forward. Returns (mean, log_std), both [B, act]."""
    B, obs_size = obs.shape
    w1, b1, w2, b2, wm, bm, ws, bs = params
    h1 = w1.shape[1]
    h2 = w2.shape[1]
    act = wm.shape[1]

    # Fuse the two heads and zero-pad to a lane-dense output width so the
    # writeback is a full-width unmasked store.
    head_pad = max(128, _round_up(2 * act, 128))
    wh = jnp.concatenate([wm, ws], axis=1)
    bh = jnp.concatenate([bm, bs], axis=1)
    if head_pad != 2 * act:
        wh = jnp.pad(wh, ((0, 0), (0, head_pad - 2 * act)))
        bh = jnp.pad(bh, ((0, 0), (0, head_pad - 2 * act)))

    # Only the tiny, reused weights are cast in the wrapper; obs stays in its
    # HBM dtype and is cast inside the kernel (no separate HBM convert pass).
    w1c = w1.astype(compute_dtype)
    w2c = w2.astype(compute_dtype)
    whc = wh.astype(compute_dtype)
    b1f = b1.astype(jnp.float32)
    b2f = b2.astype(jnp.float32)
    bhf = bh.astype(jnp.float32)

    obs_itemsize = jnp.dtype(obs.dtype).itemsize
    w_itemsize = jnp.dtype(compute_dtype).itemsize
    weight_bytes = int((w1c.size + w2c.size + whc.size) * w_itemsize
                       + (b1f.size + b2f.size + bhf.size) * 4)

    default_scoped, physical_vmem, num_tc = _tpu_generation()
    block_b, n_steps = _choose_grid(B, obs_size, head_pad, h1, h2,
                                    obs_itemsize, weight_bytes,
                                    default_scoped, num_tc, block_b)
    B_pad = block_b * n_steps
    obs_p = obs if B_pad == B else jnp.pad(obs, ((0, B_pad - B), (0, 0)))
    grid = (n_steps,)

    out_shape = jax.ShapeDtypeStruct((B_pad, head_pad), jnp.float32)

    # Advisory cost hint so XLA can overlap this small call with other work.
    flops = int(2 * B_pad * (obs_size * h1 + h1 * h2 + h2 * head_pad))
    transcendentals = int(B_pad * head_pad)
    bytes_accessed = int(B_pad * obs_size * obs_itemsize + weight_bytes
                         + B_pad * head_pad * 4)
    cost = pl.CostEstimate(flops=flops, transcendentals=transcendentals,
                           bytes_accessed=bytes_accessed)

    # Raise the scoped-VMEM limit only when the per-generation default would
    # be exceeded; cap at ~75% of physical VMEM (64 MiB on v7x).
    vmem_need = (2 * block_b * obs_size * obs_itemsize
                 + 2 * block_b * head_pad * 4
                 + block_b * (h1 + h2) * 4
                 + 2 * weight_bytes)
    cp_kwargs = dict(dimension_semantics=("parallel",))
    if int(1.3 * vmem_need) > default_scoped:
        cap = int(0.75 * physical_vmem)
        cp_kwargs["vmem_limit_bytes"] = int(
            min(max(int(1.5 * vmem_need), default_scoped), cap))

    kernel = functools.partial(actor_kernel, act=act, compute_dtype=compute_dtype)

    def _call(single_buffer_weights):
        if single_buffer_weights:
            # Constant-index weights/biases gain nothing from double-buffering;
            # single-buffer them to halve their VMEM residency (matters on v7x).
            const_spec = lambda *shape: pl.BlockSpec(
                shape, lambda i: tuple(0 for _ in shape),
                pipeline_mode=pl.Buffered(1))
        else:
            const_spec = lambda *shape: pl.BlockSpec(
                shape, lambda i: tuple(0 for _ in shape))
        return pl.pallas_call(
            kernel,
            out_shape=out_shape,
            grid_spec=pltpu.PrefetchScalarGridSpec(
                num_scalar_prefetch=0,
                grid=grid,
                in_specs=[
                    pl.BlockSpec((block_b, obs_size), lambda i: (i, 0)),  # obs tile
                    const_spec(obs_size, h1), const_spec(1, h1),          # W1, b1
                    const_spec(h1, h2), const_spec(1, h2),                # W2, b2
                    const_spec(h2, head_pad), const_spec(1, head_pad),    # Wh, bh
                ],
                out_specs=pl.BlockSpec((block_b, head_pad), lambda i: (i, 0)),
            ),
            compiler_params=pltpu.CompilerParams(**cp_kwargs),
            cost_estimate=cost,
        )(obs_p, w1c, b1f, w2c, b2f, whc, bhf)

    try:
        fused = _call(True)
    except Exception:
        # Fallback if pipeline_mode / Buffered(1) is unsupported in this jax.
        fused = _call(False)

    fused = fused[:B]
    mean = fused[:, :act]
    log_std = fused[:, act:2 * act]
    return mean, log_std


# ---------------------------------------------------------------------------
# Init + pure-JAX reference (mirror of the PyTorch module)
# ---------------------------------------------------------------------------
def init_actor_params(key, obs_size, hidden1, hidden2, action_size,
                      action_max=1.0, action_min=-1.0, action_mean_init=0.0):
    """torch.nn.Linear default init (U(-1/sqrt(fan_in), ..)) plus
    scale_layer_weights(init_noise, bias_offset) on the two heads."""
    ks = jax.random.split(key, 8)

    def linear(kw, kb, fan_in, fan_out):
        bound = 1.0 / jnp.sqrt(jnp.float32(fan_in))
        w = jax.random.uniform(kw, (fan_in, fan_out), jnp.float32, -bound, bound)
        b = jax.random.uniform(kb, (1, fan_out), jnp.float32, -bound, bound)
        return w, b

    w1, b1 = linear(ks[0], ks[1], obs_size, hidden1)
    w2, b2 = linear(ks[2], ks[3], hidden1, hidden2)

    action_scale = (action_max - action_min) / 2.0
    action_bias = (action_max + action_min) / 2.0
    mean_bias_offset = jnp.arctanh(
        (jnp.float32(action_mean_init) - action_bias) / action_scale)  # 0.0 if symmetric

    wm, bm = linear(ks[4], ks[5], hidden2, action_size)
    wm = wm * INIT_NOISE
    bm = bm * INIT_NOISE + mean_bias_offset

    ws, bs = linear(ks[6], ks[7], hidden2, action_size)
    ws = ws * INIT_NOISE
    bs = bs * INIT_NOISE + LOG_STD_INIT

    return (w1, b1, w2, b2, wm, bm, ws, bs)


def actor_forward_ref(obs, params):
    w1, b1, w2, b2, wm, bm, ws, bs = params
    h = _leaky_relu(obs @ w1 + b1)
    h = _leaky_relu(h @ w2 + b2)
    mean = h @ wm + bm
    log_std = h @ ws + bs
    log_std = (jnp.tanh(log_std) + 1.0) * 0.5 * (LOG_STD_MAX - LOG_STD_MIN) + LOG_STD_MIN
    return mean, log_std


# TODO(synk): sample_action's Normal.rsample / log_prob path is host-side RL
# glue and is intentionally left out of the kernel (forward() only).
if __name__ == "__main__":
    # Small, module-consistent shapes: batch=8 observations of size 32,
    # policy_arch=[32, 32], action_size=4.
    B, OBS, H1, H2, ACT = 8, 32, 32, 32, 4

    key = jax.random.PRNGKey(0)
    k_obs, k_params = jax.random.split(key)
    obs = jax.random.normal(k_obs, (B, OBS), dtype=jnp.float32)
    params = init_actor_params(k_params, OBS, H1, H2, ACT)

    # 1) f32 path, single grid step
    mean, log_std = actor_forward(obs, params)
    jax.block_until_ready((mean, log_std))
    mean_ref, log_std_ref = actor_forward_ref(obs, params)
    assert mean.shape == (B, ACT) and log_std.shape == (B, ACT)
    assert jnp.allclose(mean, mean_ref, atol=1e-5, rtol=1e-5)
    assert jnp.allclose(log_std, log_std_ref, atol=1e-5, rtol=1e-5)
    assert bool(jnp.all(log_std >= LOG_STD_MIN)) and bool(jnp.all(log_std <= LOG_STD_MAX))

    # 2) non-divisible larger batch: exercises batch padding
    B2 = 300
    obs2 = jax.random.normal(jax.random.PRNGKey(1), (B2, OBS), dtype=jnp.float32)
    m2, ls2 = actor_forward(obs2, params)
    jax.block_until_ready((m2, ls2))
    m2_ref, ls2_ref = actor_forward_ref(obs2, params)
    assert m2.shape == (B2, ACT) and ls2.shape == (B2, ACT)
    assert jnp.allclose(m2, m2_ref, atol=1e-5, rtol=1e-5)
    assert jnp.allclose(ls2, ls2_ref, atol=1e-5, rtol=1e-5)

    # 3) explicit small tile -> multi-step pipelined grid (exercises Buffered(1))
    m2b, ls2b = actor_forward(obs2, params, block_b=128)
    jax.block_until_ready((m2b, ls2b))
    assert jnp.allclose(m2b, m2_ref, atol=1e-5, rtol=1e-5)
    assert jnp.allclose(ls2b, ls2_ref, atol=1e-5, rtol=1e-5)

    # 4) opt-in bf16 compute path (MXU-native on v6e/v7x), f32 acc + outputs
    m3, ls3 = actor_forward(obs2, params, compute_dtype=jnp.bfloat16)
    jax.block_until_ready((m3, ls3))
    assert jnp.allclose(m3, m2_ref, atol=3e-2, rtol=3e-2)
    assert jnp.allclose(ls3, ls2_ref, atol=3e-2, rtol=3e-2)
    assert bool(jnp.all(ls3 >= LOG_STD_MIN)) and bool(jnp.all(ls3 <= LOG_STD_MAX))

    print("KERNEL_OK")
</pallas_src>

<mosaic_0001>
module attributes {stable_mosaic.version = 11 : i64} {
  func.func @actor_kernel(%arg0: i32, %arg1: memref<8x32xf32, #tpu.memory_space<vmem>>, %arg2: memref<32x32xf32, #tpu.memory_space<vmem>>, %arg3: memref<1x32xf32, #tpu.memory_space<vmem>>, %arg4: memref<32x32xf32, #tpu.memory_space<vmem>>, %arg5: memref<1x32xf32, #tpu.memory_space<vmem>>, %arg6: memref<32x128xf32, #tpu.memory_space<vmem>>, %arg7: memref<1x128xf32, #tpu.memory_space<vmem>>, %arg8: memref<8x128xf32, #tpu.memory_space<vmem>>) attributes {dimension_semantics = [#tpu.dimension_semantics<parallel>], iteration_bounds = array<i64: 1>, scalar_prefetch = 0 : i64, scratch_operands = 0 : i64, tpu.core_type = #tpu.core_type<tc>, window_params = [{transform_indices = @transform_0, window_bounds = array<i64: 8, 32>}, {pipeline_mode = #tpu.pipeline_mode<synchronous>, transform_indices = @transform_1, window_bounds = array<i64: 32, 32>}, {pipeline_mode = #tpu.pipeline_mode<synchronous>, transform_indices = @transform_2, window_bounds = array<i64: 1, 32>}, {pipeline_mode = #tpu.pipeline_mode<synchronous>, transform_indices = @transform_3, window_bounds = array<i64: 32, 32>}, {pipeline_mode = #tpu.pipeline_mode<synchronous>, transform_indices = @transform_4, window_bounds = array<i64: 1, 32>}, {pipeline_mode = #tpu.pipeline_mode<synchronous>, transform_indices = @transform_5, window_bounds = array<i64: 32, 128>}, {pipeline_mode = #tpu.pipeline_mode<synchronous>, transform_indices = @transform_6, window_bounds = array<i64: 1, 128>}, {transform_indices = @transform_7, window_bounds = array<i64: 8, 128>}]} {
    %c0 = arith.constant 0 : index
    %c0_0 = arith.constant 0 : index
    %0 = vector.load %arg1[%c0, %c0_0] : memref<8x32xf32, #tpu.memory_space<vmem>>, vector<8x32xf32>
    %c0_1 = arith.constant 0 : index
    %c0_2 = arith.constant 0 : index
    %1 = vector.load %arg2[%c0_1, %c0_2] : memref<32x32xf32, #tpu.memory_space<vmem>>, vector<32x32xf32>
    %cst = arith.constant dense<0.000000e+00> : vector<8x32xf32>
    %2 = tpu.matmul %0, %1, %cst {dimension_numbers = #tpu.dot_dimension_numbers<[1], [0], [0], [1], [0, 0, 1, 1], [], []>} : vector<8x32xf32>, vector<32x32xf32>, vector<8x32xf32> -> vector<8x32xf32>
    %c0_3 = arith.constant 0 : index
    %c0_4 = arith.constant 0 : index
    %3 = vector.load %arg3[%c0_3, %c0_4] : memref<1x32xf32, #tpu.memory_space<vmem>>, vector<1x32xf32>
    %4 = vector.broadcast %3 : vector<1x32xf32> to vector<8x32xf32>
    %5 = arith.addf %2, %4 : vector<8x32xf32>
    %cst_5 = arith.constant 0.00999999977 : f32
    %6 = vector.broadcast %cst_5 : f32 to vector<8x32xf32>
    %7 = arith.mulf %6, %5 : vector<8x32xf32>
    %8 = arith.maximumf %5, %7 : vector<8x32xf32>
    %c0_6 = arith.constant 0 : index
    %c0_7 = arith.constant 0 : index
    %9 = vector.load %arg4[%c0_6, %c0_7] : memref<32x32xf32, #tpu.memory_space<vmem>>, vector<32x32xf32>
    %cst_8 = arith.constant dense<0.000000e+00> : vector<8x32xf32>
    %10 = tpu.matmul %8, %9, %cst_8 {dimension_numbers = #tpu.dot_dimension_numbers<[1], [0], [0], [1], [0, 0, 1, 1], [], []>} : vector<8x32xf32>, vector<32x32xf32>, vector<8x32xf32> -> vector<8x32xf32>
    %c0_9 = arith.constant 0 : index
    %c0_10 = arith.constant 0 : index
    %11 = vector.load %arg5[%c0_9, %c0_10] : memref<1x32xf32, #tpu.memory_space<vmem>>, vector<1x32xf32>
    %12 = vector.broadcast %11 : vector<1x32xf32> to vector<8x32xf32>
    %13 = arith.addf %10, %12 : vector<8x32xf32>
    %cst_11 = arith.constant 0.00999999977 : f32
    %14 = vector.broadcast %cst_11 : f32 to vector<8x32xf32>
    %15 = arith.mulf %14, %13 : vector<8x32xf32>
    %16 = arith.maximumf %13, %15 : vector<8x32xf32>
    %c0_12 = arith.constant 0 : index
    %c0_13 = arith.constant 0 : index
    %17 = vector.load %arg6[%c0_12, %c0_13] : memref<32x128xf32, #tpu.memory_space<vmem>>, vector<32x128xf32>
    %cst_14 = arith.constant dense<0.000000e+00> : vector<8x128xf32>
    %18 = tpu.matmul %16, %17, %cst_14 {dimension_numbers = #tpu.dot_dimension_numbers<[1], [0], [0], [1], [0, 0, 1, 1], [], []>} : vector<8x32xf32>, vector<32x128xf32>, vector<8x128xf32> -> vector<8x128xf32>
    %c0_15 = arith.constant 0 : index
    %c0_16 = arith.constant 0 : index
    %19 = vector.load %arg7[%c0_15, %c0_16] : memref<1x128xf32, #tpu.memory_space<vmem>>, vector<1x128xf32>
    %20 = vector.broadcast %19 : vector<1x128xf32> to vector<8x128xf32>
    %21 = arith.addf %18, %20 : vector<8x128xf32>
    %22 = math.tanh %21 : vector<8x128xf32>
    %cst_17 = arith.constant 1.000000e+00 : f32
    %23 = vector.broadcast %cst_17 : f32 to vector<8x128xf32>
    %24 = arith.addf %22, %23 : vector<8x128xf32>
    %cst_18 = arith.constant 3.500000e+00 : f32
    %25 = vector.broadcast %cst_18 : f32 to vector<8x128xf32>
    %26 = arith.mulf %24, %25 : vector<8x128xf32>
    %cst_19 = arith.constant -5.000000e+00 : f32
    %27 = vector.broadcast %cst_19 : f32 to vector<8x128xf32>
    %28 = arith.addf %26, %27 : vector<8x128xf32>
    %29 = tpu.iota {dimensions = array<i32: 1>} : vector<8x128xi32>
    %c4_i32 = arith.constant 4 : i32
    %30 = vector.broadcast %c4_i32 : i32 to vector<8x128xi32>
    %31 = arith.cmpi sge, %29, %30 : vector<8x128xi32>
    %32 = arith.select %31, %28, %21 : vector<8x128xi1>, vector<8x128xf32>
    %c0_20 = arith.constant 0 : index
    %c0_21 = arith.constant 0 : index
    %33 = vector.load %arg8[%c0_20, %c0_21] : memref<8x128xf32, #tpu.memory_space<vmem>>, vector<8x128xf32>
    tpu.vector_store %arg8[%c0_20, %c0_21], %32 {strides = array<i32>} : memref<8x128xf32, #tpu.memory_space<vmem>>, vector<8x128xf32>,
    return
  }
  func.func @transform_0(%arg0: i32) -> (i32, i32) {
    %c0_i32 = arith.constant 0 : i32
    %c0_i32_0 = arith.constant 0 : i32
    return %arg0, %c0_i32 : i32, i32
  }
  func.func @transform_1(%arg0: i32) -> (i32, i32) {
    %c0_i32 = arith.constant 0 : i32
    %c0_i32_0 = arith.constant 0 : i32
    %c0_i32_1 = arith.constant 0 : i32
    return %c0_i32, %c0_i32_0 : i32, i32
  }
  func.func @transform_2(%arg0: i32) -> (i32, i32) {
    %c0_i32 = arith.constant 0 : i32
    %c0_i32_0 = arith.constant 0 : i32
    %c0_i32_1 = arith.constant 0 : i32
    return %c0_i32, %c0_i32_0 : i32, i32
  }
  func.func @transform_3(%arg0: i32) -> (i32, i32) {
    %c0_i32 = arith.constant 0 : i32
    %c0_i32_0 = arith.constant 0 : i32
    %c0_i32_1 = arith.constant 0 : i32
    return %c0_i32, %c0_i32_0 : i32, i32
  }
  func.func @transform_4(%arg0: i32) -> (i32, i32) {
    %c0_i32 = arith.constant 0 : i32
    %c0_i32_0 = arith.constant 0 : i32
    %c0_i32_1 = arith.constant 0 : i32
    return %c0_i32, %c0_i32_0 : i32, i32
  }
  func.func @transform_5(%arg0: i32) -> (i32, i32) {
    %c0_i32 = arith.constant 0 : i32
    %c0_i32_0 = arith.constant 0 : i32
    %c0_i32_1 = arith.constant 0 : i32
    return %c0_i32, %c0_i32_0 : i32, i32
  }
  func.func @transform_6(%arg0: i32) -> (i32, i32) {
    %c0_i32 = arith.constant 0 : i32
    %c0_i32_0 = arith.constant 0 : i32
    %c0_i32_1 = arith.constant 0 : i32
    return %c0_i32, %c0_i32_0 : i32, i32
  }
  func.func @transform_7(%arg0: i32) -> (i32, i32) {
    %c0_i32 = arith.constant 0 : i32
    %c0_i32_0 = arith.constant 0 : i32
    return %arg0, %c0_i32 : i32, i32
  }
}

module attributes {stable_mosaic.version = 11 : i64} {
  func.func @actor_kernel(%arg0: i32, %arg1: memref<8x32xf32, #tpu.memory_space<vmem>>, %arg2: memref<32x32xf32, #tpu.memory_space<vmem>>, %arg3: memref<1x32xf32, #tpu.memory_space<vmem>>, %arg4: memref<32x32xf32, #tpu.memory_space<vmem>>, %arg5: memref<1x32xf32, #tpu.memory_space<vmem>>, %arg6: memref<32x128xf32, #tpu.memory_space<vmem>>, %arg7: memref<1x128xf32, #tpu.memory_space<vmem>>, %arg8: memref<8x128xf32, #tpu.memory_space<vmem>>) attributes {dimension_semantics = [#tpu.dimension_semantics<parallel>], iteration_bounds = array<i64: 1>, scalar_prefetch = 0 : i64, scratch_operands = 0 : i64, tpu.core_type = #tpu.core_type<tc>, window_params = [{transform_indices = @transform_0, window_bounds = array<i64: 8, 32>}, {pipeline_mode = #tpu.pipeline_mode<synchronous>, transform_indices = @transform_1, window_bounds = array<i64: 32, 32>}, {pipeline_mode = #tpu.pipeline_mode<synchronous>, transform_indices = @transform_2, window_bounds = array<i64: 1, 32>}, {pipeline_mode = #tpu.pipeline_mode<synchronous>, transform_indices = @transform_3, window_bounds = array<i64: 32, 32>}, {pipeline_mode = #tpu.pipeline_mode<synchronous>, transform_indices = @transform_4, window_bounds = array<i64: 1, 32>}, {pipeline_mode = #tpu.pipeline_mode<synchronous>, transform_indices = @transform_5, window_bounds = array<i64: 32, 128>}, {pipeline_mode = #tpu.pipeline_mode<synchronous>, transform_indices = @transform_6, window_bounds = array<i64: 1, 128>}, {transform_indices = @transform_7, window_bounds = array<i64: 8, 128>}]} {
    %c0 = arith.constant 0 : index
    %c0_0 = arith.constant 0 : index
    %0 = vector.load %arg1[%c0, %c0_0] : memref<8x32xf32, #tpu.memory_space<vmem>>, vector<8x32xf32>
    %c0_1 = arith.constant 0 : index
    %c0_2 = arith.constant 0 : index
    %1 = vector.load %arg2[%c0_1, %c0_2] : memref<32x32xf32, #tpu.memory_space<vmem>>, vector<32x32xf32>
    %cst = arith.constant dense<0.000000e+00> : vector<8x32xf32>
    %2 = tpu.matmul %0, %1, %cst {dimension_numbers = #tpu.dot_dimension_numbers<[1], [0], [0], [1], [0, 0, 1, 1], [], []>} : vector<8x32xf32>, vector<32x32xf32>, vector<8x32xf32> -> vector<8x32xf32>
    %c0_3 = arith.constant 0 : index
    %c0_4 = arith.constant 0 : index
    %3 = vector.load %arg3[%c0_3, %c0_4] : memref<1x32xf32, #tpu.memory_space<vmem>>, vector<1x32xf32>
    %4 = vector.broadcast %3 : vector<1x32xf32> to vector<8x32xf32>
    %5 = arith.addf %2, %4 : vector<8x32xf32>
    %cst_5 = arith.constant 0.00999999977 : f32
    %6 = vector.broadcast %cst_5 : f32 to vector<8x32xf32>
    %7 = arith.mulf %6, %5 : vector<8x32xf32>
    %8 = arith.maximumf %5, %7 : vector<8x32xf32>
    %c0_6 = arith.constant 0 : index
    %c0_7 = arith.constant 0 : index
    %9 = vector.load %arg4[%c0_6, %c0_7] : memref<32x32xf32, #tpu.memory_space<vmem>>, vector<32x32xf32>
    %cst_8 = arith.constant dense<0.000000e+00> : vector<8x32xf32>
    %10 = tpu.matmul %8, %9, %cst_8 {dimension_numbers = #tpu.dot_dimension_numbers<[1], [0], [0], [1], [0, 0, 1, 1], [], []>} : vector<8x32xf32>, vector<32x32xf32>, vector<8x32xf32> -> vector<8x32xf32>
    %c0_9 = arith.constant 0 : index
    %c0_10 = arith.constant 0 : index
    %11 = vector.load %arg5[%c0_9, %c0_10] : memref<1x32xf32, #tpu.memory_space<vmem>>, vector<1x32xf32>
    %12 = vector.broadcast %11 : vector<1x32xf32> to vector<8x32xf32>
    %13 = arith.addf %10, %12 : vector<8x32xf32>
    %cst_11 = arith.constant 0.00999999977 : f32
    %14 = vector.broadcast %cst_11 : f32 to vector<8x32xf32>
    %15 = arith.mulf %14, %13 : vector<8x32xf32>
    %16 = arith.maximumf %13, %15 : vector<8x32xf32>
    %c0_12 = arith.constant 0 : index
    %c0_13 = arith.constant 0 : index
    %17 = vector.load %arg6[%c0_12, %c0_13] : memref<32x128xf32, #tpu.memory_space<vmem>>, vector<32x128xf32>
    %cst_14 = arith.constant dense<0.000000e+00> : vector<8x128xf32>
    %18 = tpu.matmul %16, %17, %cst_14 {dimension_numbers = #tpu.dot_dimension_numbers<[1], [0], [0], [1], [0, 0, 1, 1], [], []>} : vector<8x32xf32>, vector<32x128xf32>, vector<8x128xf32> -> vector<8x128xf32>
    %c0_15 = arith.constant 0 : index
    %c0_16 = arith.constant 0 : index
    %19 = vector.load %arg7[%c0_15, %c0_16] : memref<1x128xf32, #tpu.memory_space<vmem>>, vector<1x128xf32>
    %20 = vector.broadcast %19 : vector<1x128xf32> to vector<8x128xf32>
    %21 = arith.addf %18, %20 : vector<8x128xf32>
    %22 = math.tanh %21 : vector<8x128xf32>
    %cst_17 = arith.constant 1.000000e+00 : f32
    %23 = vector.broadcast %cst_17 : f32 to vector<8x128xf32>
    %24 = arith.addf %22, %23 : vector<8x128xf32>
    %cst_18 = arith.constant 3.500000e+00 : f32
    %25 = vector.broadcast %cst_18 : f32 to vector<8x128xf32>
    %26 = arith.mulf %24, %25 : vector<8x128xf32>
    %cst_19 = arith.constant -5.000000e+00 : f32
    %27 = vector.broadcast %cst_19 : f32 to vector<8x128xf32>
    %28 = arith.addf %26, %27 : vector<8x128xf32>
    %29 = tpu.iota {dimensions = array<i32: 1>} : vector<8x128xi32>
    %c4_i32 = arith.constant 4 : i32
    %30 = vector.broadcast %c4_i32 : i32 to vector<8x128xi32>
    %31 = arith.cmpi sge, %29, %30 : vector<8x128xi32>
    %32 = arith.select %31, %28, %21 : vector<8x128xi1>, vector<8x128xf32>
    %c0_20 = arith.constant 0 : index
    %c0_21 = arith.constant 0 : index
    %33 = vector.load %arg8[%c0_20, %c0_21] : memref<8x128xf32, #tpu.memory_space<vmem>>, vector<8x128xf32>
    tpu.vector_store %arg8[%c0_20, %c0_21], %32 {strides = array<i32>} : memref<8x128xf32, #tpu.memory_space<vmem>>, vector<8x128xf32>,
    return
  }
  func.func @transform_0(%arg0: i32) -> (i32, i32) {
    %c0_i32 = arith.constant 0 : i32
    %c0_i32_0 = arith.constant 0 : i32
    return %arg0, %c0_i32 : i32, i32
  }
  func.func @transform_1(%arg0: i32) -> (i32, i32) {
    %c0_i32 = arith.constant 0 : i32
    %c0_i32_0 = arith.constant 0 : i32
    %c0_i32_1 = arith.constant 0 : i32
    return %c0_i32, %c0_i32_0 : i32, i32
  }
  func.func @transform_2(%arg0: i32) -> (i32, i32) {
    %c0_i32 = arith.constant 0 : i32
    %c0_i32_0 = arith.constant 0 : i32
    %c0_i32_1 = arith.constant 0 : i32
    return %c0_i32, %c0_i32_0 : i32, i32
  }
  func.func @transform_3(%arg0: i32) -> (i32, i32) {
    %c0_i32 = arith.constant 0 : i32
    %c0_i32_0 = arith.constant 0 : i32
    %c0_i32_1 = arith.constant 0 : i32
    return %c0_i32, %c0_i32_0 : i32, i32
  }
  func.func @transform_4(%arg0: i32) -> (i32, i32) {
    %c0_i32 = arith.constant 0 : i32
    %c0_i32_0 = arith.constant 0 : i32
    %c0_i32_1 = arith.constant 0 : i32
    return %c0_i32, %c0_i32_0 : i32, i32
  }
  func.func @transform_5(%arg0: i32) -> (i32, i32) {
    %c0_i32 = arith.constant 0 : i32
    %c0_i32_0 = arith.constant 0 : i32
    %c0_i32_1 = arith.constant 0 : i32
    return %c0_i32, %c0_i32_0 : i32, i32
  }
  func.func @transform_6(%arg0: i32) -> (i32, i32) {
    %c0_i32 = arith.constant 0 : i32
    %c0_i32_0 = arith.constant 0 : i32
    %c0_i32_1 = arith.constant 0 : i32
    return %c0_i32, %c0_i32_0 : i32, i32
  }
  func.func @transform_7(%arg0: i32) -> (i32, i32) {
    %c0_i32 = arith.constant 0 : i32
    %c0_i32_0 = arith.constant 0 : i32
    return %arg0, %c0_i32 : i32, i32
  }
}

</mosaic_0001>

<bundles_post_ra>
// kernel: tpu_custom_call.1
= control target key start
LH: loop header
LB: loop body
LE: loop exit
PB: predicated region body
PF: predicated region fallthrough
CT: control target
= control target key end

     0   :  { %12 = vsyncpa [#allocation3], 0  ;;  %s625_s0 = inlined_call_operand.hbm [shape: f32[8,32], index: 0, kind: input, shape index: {}]   ;;  %s626_s1 = inlined_call_operand.hbm [shape: f32[32,32], index: 1, kind: input, shape index: {}]   ;;  %s627_s2 = inlined_call_operand.vmem [shape: f32[1,32], index: 2, kind: input, shape index: {}]   ;;  %s628_s3 = inlined_call_operand.hbm [shape: f32[32,32], index: 3, kind: input, shape index: {}]   ;;  %s629_s4 = inlined_call_operand.vmem [shape: f32[1,32], index: 4, kind: input, shape index: {}]   ;;  %s630_s5 = inlined_call_operand.hbm [shape: f32[32,128], index: 5, kind: input, shape index: {}]   ;;  %s631_s6 = inlined_call_operand.vmem [shape: f32[1,128], index: 6, kind: input, shape index: {}]   ;;  %s632_s7 = inlined_call_operand.hbm [shape: f32[8,128], index: 7, kind: output, shape index: {}]  }
   0x1   :  { %13 = vsyncpa [#allocation6], 0 }
   0x2   :  { %14 = vsyncpa [#allocation9], 0 }
   0x3   :  { %15 = vsyncpa [#allocation4], 0  ;;  %s537_s24 = smov [#allocation5]  }
   0x4   :  { %s31_s25 = sshll.u32 %s537_s24, 4  ;;  %s32_s25 = int_to_ptr.vmem [resolvable:$true] %s31_s25 }
   0x5   :  { %s437_s26 = scalar_lea.vmem %s32_s25, 512  ;;  %p442_p1 = scmp.lt.s32.totalorder %s32_s25, %s32_s25 }
   0x6   :  { %p438_p0 = scmp.ne.s32.totalorder %s32_s25, %s437_s26  ;;  %p443_p2 = scmp.lt.s32.totalorder %s437_s26, %s437_s26 }
   0x8   :  { %p444_p3 = por %p443_p2, %p442_p1 }
   0xa   :  { %p445_p4 = pnand %p444_p3, %p438_p0 }
   0xc   :  { %448 = shalt.err (!%p445_p4)
}
   0xd   :  { %s538_s27 = smov 128   ;;  %s539_s28 = smov 8  }
   0xe   :  { %37 = dma.hbm_to_vmem [thread:$0]  %s626_s1, 512, %s32_s25, [#allocation6], %s538_s27, %s538_s27, %s539_s28  }
   0xf   :  { %s540_s8 = smov [#allocation2]   ;;  %s541_s10 = smov [#allocation7]  }
  0x10   :  { %s22_s9 = sshll.u32 %s540_s8, 4  ;;  %s45_s11 = sshll.u32 %s541_s10, 4  ;;  %s23_s9 = int_to_ptr.vmem [resolvable:$true] %s22_s9  ;;  %s46_s11 = int_to_ptr.vmem [resolvable:$true] %s45_s11 }
  0x11   :  { %s457_s12 = scalar_lea.vmem %s23_s9, 128  ;;  %p462_p6 = scmp.lt.s32.totalorder %s23_s9, %s23_s9 }
  0x12   :  { %p458_p5 = scmp.ne.s32.totalorder %s23_s9, %s457_s12  ;;  %p463_p7 = scmp.lt.s32.totalorder %s457_s12, %s457_s12 }
  0x14   :  { %p464_p8 = por %p463_p7, %p462_p6 }
  0x16   :  { %p465_p9 = pnand %p464_p8, %p458_p5 }
  0x18   :  { %468 = shalt.err (!%p465_p9)
}
  0x19   :  { %25 = dma.hbm_to_vmem [thread:$0]  %s625_s0, 128, %s23_s9, [#allocation3]  }
  0x1a   :  { %s477_s15 = scalar_lea.vmem %s46_s11, 512  ;;  %p482_p11 = scmp.lt.s32.totalorder %s46_s11, %s46_s11 }
  0x1b   :  { %p478_p10 = scmp.ne.s32.totalorder %s46_s11, %s477_s15  ;;  %p483_p12 = scmp.lt.s32.totalorder %s477_s15, %s477_s15 }
  0x1d   :  { %p484_p13 = por %p483_p12, %p482_p11 }
  0x1f   :  { %p485_p0 = pnand %p484_p13, %p478_p10 }
  0x21   :  { %488 = shalt.err (!%p485_p0)
}
  0x22   :  { %51 = dma.hbm_to_vmem [thread:$0]  %s628_s3, 512, %s46_s11, [#allocation6], %s538_s27, %s538_s27, %s539_s28  }
  0x23   :  { %s542_s17 = smov [#allocation8]  }
  0x24   :  { %s59_s18 = sshll.u32 %s542_s17, 4  ;;  %s60_s18 = int_to_ptr.vmem [resolvable:$true] %s59_s18 }
  0x25   :  { %s497_s19 = scalar_lea.vmem %s60_s18, 512  ;;  %p502_p2 = scmp.lt.s32.totalorder %s60_s18, %s60_s18 }
  0x26   :  { %p498_p1 = scmp.ne.s32.totalorder %s60_s18, %s497_s19  ;;  %p503_p3 = scmp.lt.s32.totalorder %s497_s19, %s497_s19 }
  0x28   :  { %p504_p4 = por %p503_p3, %p502_p2 }
  0x2a   :  { %p505_p5 = pnand %p504_p4, %p498_p1 }
  0x2c   :  { %508 = shalt.err (!%p505_p5)
}
  0x2d   :  { %65 = dma.hbm_to_vmem [thread:$0]  %s630_s5, 512, %s60_s18, [#allocation9], %s538_s27, %s538_s27, %s539_s28  }
  0x2e   :  { %529 = dma.done.wait [#allocation3], 128  }
  0x2f   :  { %530 = vsyncadd [#allocation3], 4294967168 }
  0x30   :  { %531 = dma.done.wait [#allocation6], 1024  }
  0x31   :  { %532 = vsyncadd [#allocation6], 4294966272 }
  0x32   :  { %533 = dma.done.wait [#allocation9], 512  }
  0x33   :  { %534 = vsyncadd [#allocation9], 4294966784  ;;  %v543_v0 = vmov 0.0   ;;  %vm544_vm0 = vmmov 0   ;;  %v84_v1 = vld [vmem:[#allocation5 + $0x18] sm:$0xff]  ;;  %v83_v2 = vld [vmem:[#allocation5 + $0x10] sm:$0xff]  ;;  %v342_v30 = vlaneseq }
  0x34   :  { %385 = vmatprep.subr.mxu0 %v543_v0  ;;  %393 = vmatprep.mubr.msk.f32.mxu0 %vm544_vm0, %v543_v0  ;;  %v82_v3 = vld [vmem:[#allocation5 + $0x8] sm:$0xff]  ;;  %v81_v4 = vld [vmem:[#allocation5] sm:$0xff]  ;;  %v80_v5 = vld [vmem:[#allocation2] sm:$0xff]  ;;  %vm92_vm1 = vcmask 261120  }
  0x35   :  { %396 = vmatprep.subr.mxu1 %v543_v0  ;;  %404 = vmatprep.mubr.msk.f32.mxu1 %vm544_vm0, %v543_v0  ;;  %v171_v6 = vld [vmem:[#allocation7 + $0x18] sm:$0xff]  ;;  %v170_v7 = vld [vmem:[#allocation7 + $0x10] sm:$0xff]  ;;  %v169_v8 = vld [vmem:[#allocation7 + $0x8] sm:$0xff]  ;;  %v343_v32 = vand.u32 127, %v342_v30 }
  0x36   :  { %386 = vmatpush3.msra.mxu0 %v84_v1  ;;  %397 = vmatpush3.msra.mxu1 %v171_v6  ;;  %v168_v9 = vld [vmem:[#allocation7] sm:$0xff]  ;;  %v364_v10 = vld [vmem:[%s627_s2] ss:$0 sm:$0xff]  ;;  %v256_v17 = vld [vmem:[#allocation8 + $0x10] sm:$0xff] }
  0x37   :  { %387 = vmatprep.subr.mxu0 %v543_v0  ;;  %398 = vmatprep.subr.mxu1 %v543_v0  ;;  %v257_v16 = vld [vmem:[#allocation8 + $0x18] sm:$0xff]  ;;  %v255_v18 = vld [vmem:[#allocation8 + $0x8] sm:$0xff]  ;;  %v254_v19 = vld [vmem:[#allocation8] sm:$0xff]  ;;  %vm344_vm2 = vcmp.ge.s32.totalorder %v343_v32, 4 }
  0x38   :  { %388 = vmatpush3.msra.mxu0 %v83_v2  ;;  %399 = vmatpush3.msra.mxu1 %v170_v7  ;;  %v366_v20 = vld [vmem:[%s629_s4] ss:$0 sm:$0xff]  ;;  %s545_s4 = smov [#allocation10]  }
  0x39   :  { %389 = vmatprep.subr.mxu0 %v543_v0  ;;  %400 = vmatprep.subr.mxu1 %v543_v0  ;;  %v368_v26 = vld [vmem:[%s631_s6] ss:$0 sm:$0xff]  ;;  %s353_s24 = sshll.u32 %s545_s4, 4  ;;  %s354_s24 = int_to_ptr.vmem [resolvable:$true] %s353_s24 }
  0x3a   :  { %390 = vmatpush3.msra.mxu0 %v82_v3  ;;  %401 = vmatpush3.msra.mxu1 %v169_v8  ;;  %s509_s25 = scalar_lea.vmem %s354_s24, 128  ;;  %p514_p7 = scmp.lt.s32.totalorder %s354_s24, %s354_s24 }
  0x3b   :  { %391 = vmatprep.subr.mxu0 %v543_v0  ;;  %402 = vmatprep.subr.mxu1 %v543_v0  ;;  %p510_p6 = scmp.ne.s32.totalorder %s354_s24, %s509_s25  ;;  %p515_p8 = scmp.lt.s32.totalorder %s509_s25, %s509_s25 }
  0x3c   :  { %392 = vmatpush3.msra.mxu0 %v81_v4  ;;  %403 = vmatpush3.msra.mxu1 %v168_v9 }
  0x3d   :  { %394 = vmatmul.mubr.msk.f32.vlgmr.msra.gmra.mxu0 %vm92_vm1, %v80_v5  ;;  %407 = vmatprep.subr.mxu0 %v543_v0  ;;  %p516_p9 = por %p515_p8, %p514_p7 }
  0x3e   :  { %415 = vmatprep.mubr.msk.f32.mxu0 %vm544_vm0, %v543_v0  ;;  %408 = vmatpush3.msra.mxu0 %v257_v16 }
  0x3f   :  { %409 = vmatprep.subr.mxu0 %v543_v0  ;;  %p517_p10 = pnand %p516_p9, %p510_p6 }
  0x40   :  { %410 = vmatpush3.msra.mxu0 %v256_v17 }
  0x41   :  { %411 = vmatprep.subr.mxu0 %v543_v0 }
  0x42   :  { %412 = vmatpush3.msra.mxu0 %v255_v18 }
  0x43   :  { %413 = vmatprep.subr.mxu0 %v543_v0 }
  0x44   :  { %414 = vmatpush3.msra.mxu0 %v254_v19 }
  0xfd   :  { %v162_v11 = vpop.f32.mrf.mxu0 }
  0xfe   :  { %v163_v12 = vadd.f32 %v364_v10, %v162_v11 }
  0xff   :  { %v395_v13 = vpop.f32.mrf.mxu0 }
 0x100   :  { %v166_v14 = vmul.f32 0.01, %v163_v12 }
 0x102   :  { %v167_v15 = vmax.f32 %v163_v12, %v166_v14 }
 0x104   :  { %405 = vmatmul.mubr.msk.f32.vlgmr.msra.gmra.mxu1 %vm92_vm1, %v167_v15 }
 0x1c4   :  { %v248_v21 = vpop.f32.mrf.mxu1 }
 0x1c5   :  { %v249_v22 = vadd.f32 %v366_v20, %v248_v21 }
 0x1c6   :  { %v406_v23 = vpop.f32.mrf.mxu1 }
 0x1c7   :  { %v252_v24 = vmul.f32 0.01, %v249_v22 }
 0x1c9   :  { %v253_v25 = vmax.f32 %v249_v22, %v252_v24 }
 0x1cb   :  { %416 = vmatmul.mubr.msk.f32.vlgmr.msra.gmra.mxu0 %vm92_vm1, %v253_v25 }
 0x28b   :  { %v334_v27 = vpop.f32.mrf.mxu0 }
 0x28c   :  { %v335_v28 = vadd.f32 %v368_v26, %v334_v27 }
 0x28d   :  { %v417_v29 = vpop.f32.mrf.mxu0 }
 0x28e   :  { %427 = vtanh.f32 %v335_v28 }
 0x29b   :  { %v428_v31 = vpop.eup %427 }
 0x29c   :  { %v339_v33 = vadd.f32 1.0, %v428_v31 }
 0x29e   :  { %v340_v34 = vmul.f32 3.5, %v339_v33 }
 0x2a0   :  { %v341_v35 = vadd.f32 -5.0, %v340_v34 }
 0x2a2   :  { %v345_v36 = vsel %vm344_vm2, %v341_v35, %v335_v28 }
 0x2a3   :  { %346 = vst [vmem:[#allocation10] sm:$0xff] %v345_v36 }
 0x2a4   :  { %520 = shalt.err (!%p517_p10)
}
 0x2a5   :  { %356 = dma.vmem_to_hbm [thread:$0]  %s354_s24, 128, %s632_s7, [#allocation4]  }
 0x2a6   :  { %535 = dma.done.wait [#allocation4], 128  }
 0x2a7   :  { %536 = vsyncadd [#allocation4], 4294967168 }
 0x2a8   :  { %360 = vsyncpa [#allocation3], 1 }
 0x2a9   :  { %361 = vsyncpa [#allocation6], 1 }
 0x2aa   :  { %362 = vsyncpa [#allocation9], 1 }
 0x2ab   :  { %363 = vsyncpa [#allocation4], 1 }

// kernel: tpu_custom_call.1
= control target key start
LH: loop header
LB: loop body
LE: loop exit
PB: predicated region body
PF: predicated region fallthrough
CT: control target
= control target key end

     0   :  { %12 = vsyncpa [#allocation3], 0  ;;  %s625_s0 = inlined_call_operand.hbm [shape: f32[8,32], index: 0, kind: input, shape index: {}]   ;;  %s626_s1 = inlined_call_operand.hbm [shape: f32[32,32], index: 1, kind: input, shape index: {}]   ;;  %s627_s2 = inlined_call_operand.vmem [shape: f32[1,32], index: 2, kind: input, shape index: {}]   ;;  %s628_s3 = inlined_call_operand.hbm [shape: f32[32,32], index: 3, kind: input, shape index: {}]   ;;  %s629_s4 = inlined_call_operand.vmem [shape: f32[1,32], index: 4, kind: input, shape index: {}]   ;;  %s630_s5 = inlined_call_operand.hbm [shape: f32[32,128], index: 5, kind: input, shape index: {}]   ;;  %s631_s6 = inlined_call_operand.vmem [shape: f32[1,128], index: 6, kind: input, shape index: {}]   ;;  %s632_s7 = inlined_call_operand.hbm [shape: f32[8,128], index: 7, kind: output, shape index: {}]  }
   0x1   :  { %13 = vsyncpa [#allocation6], 0 }
   0x2   :  { %14 = vsyncpa [#allocation9], 0 }
   0x3   :  { %15 = vsyncpa [#allocation4], 0  ;;  %s537_s24 = smov [#allocation5]  }
   0x4   :  { %s31_s25 = sshll.u32 %s537_s24, 4  ;;  %s32_s25 = int_to_ptr.vmem [resolvable:$true] %s31_s25 }
   0x5   :  { %s437_s26 = scalar_lea.vmem %s32_s25, 512  ;;  %p442_p1 = scmp.lt.s32.totalorder %s32_s25, %s32_s25 }
   0x6   :  { %p438_p0 = scmp.ne.s32.totalorder %s32_s25, %s437_s26  ;;  %p443_p2 = scmp.lt.s32.totalorder %s437_s26, %s437_s26 }
   0x8   :  { %p444_p3 = por %p443_p2, %p442_p1 }
   0xa   :  { %p445_p4 = pnand %p444_p3, %p438_p0 }
   0xc   :  { %448 = shalt.err (!%p445_p4)
}
   0xd   :  { %s538_s27 = smov 128   ;;  %s539_s28 = smov 8  }
   0xe   :  { %37 = dma.hbm_to_vmem [thread:$0]  %s626_s1, 512, %s32_s25, [#allocation6], %s538_s27, %s538_s27, %s539_s28  }
   0xf   :  { %s540_s8 = smov [#allocation2]   ;;  %s541_s10 = smov [#allocation7]  }
  0x10   :  { %s22_s9 = sshll.u32 %s540_s8, 4  ;;  %s45_s11 = sshll.u32 %s541_s10, 4  ;;  %s23_s9 = int_to_ptr.vmem [resolvable:$true] %s22_s9  ;;  %s46_s11 = int_to_ptr.vmem [resolvable:$true] %s45_s11 }
  0x11   :  { %s457_s12 = scalar_lea.vmem %s23_s9, 128  ;;  %p462_p6 = scmp.lt.s32.totalorder %s23_s9, %s23_s9 }
  0x12   :  { %p458_p5 = scmp.ne.s32.totalorder %s23_s9, %s457_s12  ;;  %p463_p7 = scmp.lt.s32.totalorder %s457_s12, %s457_s12 }
  0x14   :  { %p464_p8 = por %p463_p7, %p462_p6 }
  0x16   :  { %p465_p9 = pnand %p464_p8, %p458_p5 }
  0x18   :  { %468 = shalt.err (!%p465_p9)
}
  0x19   :  { %25 = dma.hbm_to_vmem [thread:$0]  %s625_s0, 128, %s23_s9, [#allocation3]  }
  0x1a   :  { %s477_s15 = scalar_lea.vmem %s46_s11, 512  ;;  %p482_p11 = scmp.lt.s32.totalorder %s46_s11, %s46_s11 }
  0x1b   :  { %p478_p10 = scmp.ne.s32.totalorder %s46_s11, %s477_s15  ;;  %p483_p12 = scmp.lt.s32.totalorder %s477_s15, %s477_s15 }
  0x1d   :  { %p484_p13 = por %p483_p12, %p482_p11 }
  0x1f   :  { %p485_p0 = pnand %p484_p13, %p478_p10 }
  0x21   :  { %488 = shalt.err (!%p485_p0)
}
  0x22   :  { %51 = dma.hbm_to_vmem [thread:$0]  %s628_s3, 512, %s46_s11, [#allocation6], %s538_s27, %s538_s27, %s539_s28  }
  0x23   :  { %s542_s17 = smov [#allocation8]  }
  0x24   :  { %s59_s18 = sshll.u32 %s542_s17, 4  ;;  %s60_s18 = int_to_ptr.vmem [resolvable:$true] %s59_s18 }
  0x25   :  { %s497_s19 = scalar_lea.vmem %s60_s18, 512  ;;  %p502_p2 = scmp.lt.s32.totalorder %s60_s18, %s60_s18 }
  0x26   :  { %p498_p1 = scmp.ne.s32.totalorder %s60_s18, %s497_s19  ;;  %p503_p3 = scmp.lt.s32.totalorder %s497_s19, %s497_s19 }
  0x28   :  { %p504_p4 = por %p503_p3, %p502_p2 }
  0x2a   :  { %p505_p5 = pnand %p504_p4, %p498_p1 }
  0x2c   :  { %508 = shalt.err (!%p505_p5)
}
  0x2d   :  { %65 = dma.hbm_to_vmem [thread:$0]  %s630_s5, 512, %s60_s18, [#allocation9], %s538_s27, %s538_s27, %s539_s28  }
  0x2e   :  { %529 = dma.done.wait [#allocation3], 128  }
  0x2f   :  { %530 = vsyncadd [#allocation3], 4294967168 }
  0x30   :  { %531 = dma.done.wait [#allocation6], 1024  }
  0x31   :  { %532 = vsyncadd [#allocation6], 4294966272 }
  0x32   :  { %533 = dma.done.wait [#allocation9], 512  }
  0x33   :  { %534 = vsyncadd [#allocation9], 4294966784  ;;  %v543_v0 = vmov 0.0   ;;  %vm544_vm0 = vmmov 0   ;;  %v84_v1 = vld [vmem:[#allocation5 + $0x18] sm:$0xff]  ;;  %v83_v2 = vld [vmem:[#allocation5 + $0x10] sm:$0xff]  ;;  %v342_v30 = vlaneseq }
  0x34   :  { %385 = vmatprep.subr.mxu0 %v543_v0  ;;  %393 = vmatprep.mubr.msk.f32.mxu0 %vm544_vm0, %v543_v0  ;;  %v82_v3 = vld [vmem:[#allocation5 + $0x8] sm:$0xff]  ;;  %v81_v4 = vld [vmem:[#allocation5] sm:$0xff]  ;;  %v80_v5 = vld [vmem:[#allocation2] sm:$0xff]  ;;  %vm92_vm1 = vcmask 261120  }
  0x35   :  { %396 = vmatprep.subr.mxu1 %v543_v0  ;;  %404 = vmatprep.mubr.msk.f32.mxu1 %vm544_vm0, %v543_v0  ;;  %v171_v6 = vld [vmem:[#allocation7 + $0x18] sm:$0xff]  ;;  %v170_v7 = vld [vmem:[#allocation7 + $0x10] sm:$0xff]  ;;  %v169_v8 = vld [vmem:[#allocation7 + $0x8] sm:$0xff]  ;;  %v343_v32 = vand.u32 127, %v342_v30 }
  0x36   :  { %386 = vmatpush3.msra.mxu0 %v84_v1  ;;  %397 = vmatpush3.msra.mxu1 %v171_v6  ;;  %v168_v9 = vld [vmem:[#allocation7] sm:$0xff]  ;;  %v364_v10 = vld [vmem:[%s627_s2] ss:$0 sm:$0xff]  ;;  %v256_v17 = vld [vmem:[#allocation8 + $0x10] sm:$0xff] }
  0x37   :  { %387 = vmatprep.subr.mxu0 %v543_v0  ;;  %398 = vmatprep.subr.mxu1 %v543_v0  ;;  %v257_v16 = vld [vmem:[#allocation8 + $0x18] sm:$0xff]  ;;  %v255_v18 = vld [vmem:[#allocation8 + $0x8] sm:$0xff]  ;;  %v254_v19 = vld [vmem:[#allocation8] sm:$0xff]  ;;  %vm344_vm2 = vcmp.ge.s32.totalorder %v343_v32, 4 }
  0x38   :  { %388 = vmatpush3.msra.mxu0 %v83_v2  ;;  %399 = vmatpush3.msra.mxu1 %v170_v7  ;;  %v366_v20 = vld [vmem:[%s629_s4] ss:$0 sm:$0xff]  ;;  %s545_s4 = smov [#allocation10]  }
  0x39   :  { %389 = vmatprep.subr.mxu0 %v543_v0  ;;  %400 = vmatprep.subr.mxu1 %v543_v0  ;;  %v368_v26 = vld [vmem:[%s631_s6] ss:$0 sm:$0xff]  ;;  %s353_s24 = sshll.u32 %s545_s4, 4  ;;  %s354_s24 = int_to_ptr.vmem [resolvable:$true] %s353_s24 }
  0x3a   :  { %390 = vmatpush3.msra.mxu0 %v82_v3  ;;  %401 = vmatpush3.msra.mxu1 %v169_v8  ;;  %s509_s25 = scalar_lea.vmem %s354_s24, 128  ;;  %p514_p7 = scmp.lt.s32.totalorder %s354_s24, %s354_s24 }
  0x3b   :  { %391 = vmatprep.subr.mxu0 %v543_v0  ;;  %402 = vmatprep.subr.mxu1 %v543_v0  ;;  %p510_p6 = scmp.ne.s32.totalorder %s354_s24, %s509_s25  ;;  %p515_p8 = scmp.lt.s32.totalorder %s509_s25, %s509_s25 }
  0x3c   :  { %392 = vmatpush3.msra.mxu0 %v81_v4  ;;  %403 = vmatpush3.msra.mxu1 %v168_v9 }
  0x3d   :  { %394 = vmatmul.mubr.msk.f32.vlgmr.msra.gmra.mxu0 %vm92_vm1, %v80_v5  ;;  %407 = vmatprep.subr.mxu0 %v543_v0  ;;  %p516_p9 = por %p515_p8, %p514_p7 }
  0x3e   :  { %415 = vmatprep.mubr.msk.f32.mxu0 %vm544_vm0, %v543_v0  ;;  %408 = vmatpush3.msra.mxu0 %v257_v16 }
  0x3f   :  { %409 = vmatprep.subr.mxu0 %v543_v0  ;;  %p517_p10 = pnand %p516_p9, %p510_p6 }
  0x40   :  { %410 = vmatpush3.msra.mxu0 %v256_v17 }
  0x41   :  { %411 = vmatprep.subr.mxu0 %v543_v0 }
  0x42   :  { %412 = vmatpush3.msra.mxu0 %v255_v18 }
  0x43   :  { %413 = vmatprep.subr.mxu0 %v543_v0 }
  0x44   :  { %414 = vmatpush3.msra.mxu0 %v254_v19 }
  0xfd   :  { %v162_v11 = vpop.f32.mrf.mxu0 }
  0xfe   :  { %v163_v12 = vadd.f32 %v364_v10, %v162_v11 }
  0xff   :  { %v395_v13 = vpop.f32.mrf.mxu0 }
 0x100   :  { %v166_v14 = vmul.f32 0.01, %v163_v12 }
 0x102   :  { %v167_v15 = vmax.f32 %v163_v12, %v166_v14 }
 0x104   :  { %405 = vmatmul.mubr.msk.f32.vlgmr.msra.gmra.mxu1 %vm92_vm1, %v167_v15 }
 0x1c4   :  { %v248_v21 = vpop.f32.mrf.mxu1 }
 0x1c5   :  { %v249_v22 = vadd.f32 %v366_v20, %v248_v21 }
 0x1c6   :  { %v406_v23 = vpop.f32.mrf.mxu1 }
 0x1c7   :  { %v252_v24 = vmul.f32 0.01, %v249_v22 }
 0x1c9   :  { %v253_v25 = vmax.f32 %v249_v22, %v252_v24 }
 0x1cb   :  { %416 = vmatmul.mubr.msk.f32.vlgmr.msra.gmra.mxu0 %vm92_vm1, %v253_v25 }
 0x28b   :  { %v334_v27 = vpop.f32.mrf.mxu0 }
 0x28c   :  { %v335_v28 = vadd.f32 %v368_v26, %v334_v27 }
 0x28d   :  { %v417_v29 = vpop.f32.mrf.mxu0 }
 0x28e   :  { %427 = vtanh.f32 %v335_v28 }
 0x29b   :  { %v428_v31 = vpop.eup %427 }
 0x29c   :  { %v339_v33 = vadd.f32 1.0, %v428_v31 }
 0x29e   :  { %v340_v34 = vmul.f32 3.5, %v339_v33 }
 0x2a0   :  { %v341_v35 = vadd.f32 -5.0, %v340_v34 }
 0x2a2   :  { %v345_v36 = vsel %vm344_vm2, %v341_v35, %v335_v28 }
 0x2a3   :  { %346 = vst [vmem:[#allocation10] sm:$0xff] %v345_v36 }
 0x2a4   :  { %520 = shalt.err (!%p517_p10)
}
 0x2a5   :  { %356 = dma.vmem_to_hbm [thread:$0]  %s354_s24, 128, %s632_s7, [#allocation4]  }
 0x2a6   :  { %535 = dma.done.wait [#allocation4], 128  }
 0x2a7   :  { %536 = vsyncadd [#allocation4], 4294967168 }
 0x2a8   :  { %360 = vsyncpa [#allocation3], 1 }
 0x2a9   :  { %361 = vsyncpa [#allocation6], 1 }
 0x2aa   :  { %362 = vsyncpa [#allocation9], 1 }
 0x2ab   :  { %363 = vsyncpa [#allocation4], 1 }

</bundles_post_ra>
